<compile_context>
chip_gen: v6e
topology: v6e:2x2x1
jax: 0.10.0
libtpu: 0.0.40
codegen_flags: <defaults>
</compile_context>

<pallas_src>
import functools

import numpy as np

import jax
import jax.numpy as jnp
from jax.experimental import pallas as pl
from jax.experimental.pallas import tpu as pltpu


@functools.lru_cache(maxsize=None)
def _selection_matrix_np(h, w):
    """(H*W, OW) 0/1 matrix: column i*W_out+j picks flat input element (2i, 2j)."""
    h_out, w_out = (h + 1) // 2, (w + 1) // 2
    hw, ow = h * w, h_out * w_out
    rows = (2 * np.arange(h_out))[:, None] * w + 2 * np.arange(w_out)[None, :]
    sel = np.zeros((hw, ow), dtype=np.float32)
    sel[rows.reshape(-1), np.arange(ow)] = 1.0
    return sel


def _pick_n_blk(n, c):
    """Samples folded into one grid step (matmul M dim = n_blk * C).

    Targets ~256 M rows (full MXU fill on v6e/v7x; >=128 also covers v5e),
    keeps the sublane block dim (n_blk*C) a multiple of 8 when possible, and
    keeps at least 2 grid steps so v7x can shard the batch axis across both
    TensorCores.
    """
    target_rows = 256
    max_blk = max(1, target_rows // max(c, 1))
    if n >= 2:
        max_blk = min(max_blk, max(1, n // 2))   # keep >= 2 grid steps
    max_blk = min(max_blk, n)

    best = 0
    for d in range(1, max_blk + 1):
        if n % d == 0 and (d * c) % 8 == 0:
            best = d
    if best == 0:
        # No divisor gives an 8-multiple sublane block; fall back to the full
        # batch (block dim == full array dim is always a legal block shape).
        best = n
    return best


def _shortcut_kernel(x_ref, s_ref, o_ref, *, n_blk, c, pad):
    """x_ref: (n_blk*C, H*W), s_ref: (H*W, OW), o_ref: (n_blk, C_out, OW)."""
    ow = o_ref.shape[-1]

    # Stride-2 spatial decimation as ONE batched matmul with a constant 0/1
    # selection matrix: M = n_blk*C rows feed the MXU, loads stay lane-dense,
    # no lane-strided slicing.  Exact for float inputs (each output is x*1.0).
    sub = jnp.dot(x_ref[...], s_ref[...], preferred_element_type=jnp.float32)
    sub = sub.astype(o_ref.dtype)

    # Channel zero-padding: direct sliced stores (only the pad regions are
    # written with zeros; no full-block concatenate, no double write).
    if pad > 0:
        zeros = jnp.zeros((n_blk, pad, ow), o_ref.dtype)
        o_ref[:, :pad, :] = zeros
        o_ref[:, pad + c:, :] = zeros

    # Data channels: per-sample contiguous (C, OW) slice of the matmul result,
    # stored directly.  Static unrolled loop (n_blk is small, <= ~64).
    for b in range(n_blk):
        o_ref[b, pad:pad + c, :] = sub[b * c:(b + 1) * c, :]


def lambda_layer(x, planes):
    """Pallas implementation of the option-A shortcut lambda.

    x: (N, C, H, W)  ->  (N, C + 2*(planes//4), ceil(H/2), ceil(W/2))
    """
    n, c, h, w = x.shape
    h_out, w_out = (h + 1) // 2, (w + 1) // 2     # matches x[:, :, ::2, ::2]
    pad = planes // 4
    c_out = c + 2 * pad
    hw, ow = h * w, h_out * w_out

    n_blk = _pick_n_blk(n, c)
    grid = (n // n_blk,)

    # Host-built constant selection matrix (cached per (H, W)); folded at
    # compile time under jit.
    sel = jnp.asarray(_selection_matrix_np(h, w), dtype=x.dtype)

    # Lane-dense input view: (N*C, H*W) -- free contiguous reshape.
    x2 = x.reshape(n * c, hw)

    itemsize = jnp.dtype(x.dtype).itemsize
    block_bytes = (n_blk * c * hw + n_blk * c_out * ow + hw * ow) * itemsize
    # Double-buffered blocks + resident sel + headroom; clamp to a budget that
    # is safe on v5e/v6e (128 MiB physical) and v7x (64 MiB physical).
    vmem_limit = int(min(max(2 * block_bytes + (4 << 20), 32 << 20), 64 << 20))

    kernel = functools.partial(_shortcut_kernel, n_blk=n_blk, c=c, pad=pad)

    out3 = pl.pallas_call(
        kernel,
        out_shape=jax.ShapeDtypeStruct((n, c_out, ow), x.dtype),
        grid=grid,
        in_specs=[
            # n_blk samples (all channels) per step; last dim is the full
            # flattened-spatial axis -> lane-dense loads, one matmul per step.
            pl.BlockSpec((n_blk * c, hw), lambda i: (i, 0)),
            # Selection matrix: same block every step -> stays resident.
            pl.BlockSpec((hw, ow), lambda i: (0, 0)),
        ],
        out_specs=pl.BlockSpec((n_blk, c_out, ow), lambda i: (i, 0, 0)),
        compiler_params=pltpu.CompilerParams(
            dimension_semantics=("parallel",),
            vmem_limit_bytes=vmem_limit,
        ),
    )(x2, sel)

    return out3.reshape(n, c_out, h_out, w_out)


def _reference(x, planes):
    pad = planes // 4
    y = x[:, :, ::2, ::2]
    return jnp.pad(y, ((0, 0), (pad, pad), (0, 0), (0, 0)))


if __name__ == "__main__":
    key = jax.random.PRNGKey(0)

    # Case 1 (shipped demo shape): N=2, C=4, H=W=16; planes=8 -> pad=2/side,
    # output (2, 8, 8, 8).
    x1 = jax.random.normal(key, (2, 4, 16, 16), dtype=jnp.float32)
    out1 = jax.block_until_ready(lambda_layer(x1, 8))
    ref1 = _reference(x1, 8)
    assert out1.shape == ref1.shape, (out1.shape, ref1.shape)
    assert jnp.allclose(out1, ref1, atol=1e-5, rtol=1e-5), "mismatch (case 1)"

    # Case 2: exercises multi-sample blocks + a multi-step grid:
    # N=8, C=16, H=W=8; planes=32 -> pad=8/side, output (8, 32, 4, 4);
    # n_blk=4 -> grid of 2 steps, matmul M = 64 rows.
    x2 = jax.random.normal(jax.random.PRNGKey(0), (8, 16, 8, 8), dtype=jnp.float32)
    out2 = jax.block_until_ready(lambda_layer(x2, 32))
    ref2 = _reference(x2, 32)
    assert out2.shape == ref2.shape, (out2.shape, ref2.shape)
    assert jnp.allclose(out2, ref2, atol=1e-5, rtol=1e-5), "mismatch (case 2)"

    print("KERNEL_OK")
</pallas_src>

<mosaic_0001>
module attributes {stable_mosaic.version = 11 : i64} {
  func.func @_shortcut_kernel(%arg0: i32, %arg1: memref<8x256xf32, #tpu.memory_space<vmem>>, %arg2: memref<256x64xf32, #tpu.memory_space<vmem>>, %arg3: memref<2x8x64xf32, #tpu.memory_space<vmem>>) attributes {dimension_semantics = [#tpu.dimension_semantics<parallel>], iteration_bounds = array<i64: 1>, scalar_prefetch = 0 : i64, scratch_operands = 0 : i64, tpu.core_type = #tpu.core_type<tc>, window_params = [{transform_indices = @transform_0, window_bounds = array<i64: 8, 256>}, {pipeline_mode = #tpu.pipeline_mode<synchronous>, transform_indices = @transform_1, window_bounds = array<i64: 256, 64>}, {transform_indices = @transform_2, window_bounds = array<i64: 2, 8, 64>}]} {
    %c0 = arith.constant 0 : index
    %c0_0 = arith.constant 0 : index
    %0 = vector.load %arg1[%c0, %c0_0] : memref<8x256xf32, #tpu.memory_space<vmem>>, vector<8x256xf32>
    %c0_1 = arith.constant 0 : index
    %c0_2 = arith.constant 0 : index
    %1 = vector.load %arg2[%c0_1, %c0_2] : memref<256x64xf32, #tpu.memory_space<vmem>>, vector<256x64xf32>
    %cst = arith.constant dense<0.000000e+00> : vector<8x64xf32>
    %2 = tpu.matmul %0, %1, %cst {dimension_numbers = #tpu.dot_dimension_numbers<[1], [0], [0], [1], [0, 0, 1, 1], [], []>} : vector<8x256xf32>, vector<256x64xf32>, vector<8x64xf32> -> vector<8x64xf32>
    %cst_3 = arith.constant 0.000000e+00 : f32
    %3 = vector.broadcast %cst_3 : f32 to vector<2x2x64xf32>
    %c0_4 = arith.constant 0 : index
    %c0_5 = arith.constant 0 : index
    %c0_6 = arith.constant 0 : index
    %4 = vector.load %arg3[%c0_4, %c0_5, %c0_6] : memref<2x8x64xf32, #tpu.memory_space<vmem>>, vector<2x2x64xf32>
    tpu.vector_store %arg3[%c0_4, %c0_5, %c0_6], %3 {strides = array<i32>} : memref<2x8x64xf32, #tpu.memory_space<vmem>>, vector<2x2x64xf32>,
    %c0_7 = arith.constant 0 : index
    %c6 = arith.constant 6 : index
    %c0_8 = arith.constant 0 : index
    %5 = vector.load %arg3[%c0_7, %c6, %c0_8] : memref<2x8x64xf32, #tpu.memory_space<vmem>>, vector<2x2x64xf32>
    tpu.vector_store %arg3[%c0_7, %c6, %c0_8], %3 {strides = array<i32>} : memref<2x8x64xf32, #tpu.memory_space<vmem>>, vector<2x2x64xf32>,
    %6 = vector.extract_strided_slice %2 {offsets = [0, 0], sizes = [4, 64], strides = [1, 1]} : vector<8x64xf32> to vector<4x64xf32>
    %c0_9 = arith.constant 0 : index
    %c2 = arith.constant 2 : index
    %c0_10 = arith.constant 0 : index
    %7 = vector.load %arg3[%c0_9, %c2, %c0_10] : memref<2x8x64xf32, #tpu.memory_space<vmem>>, vector<1x4x64xf32>
    %8 = vector.shape_cast %7 : vector<1x4x64xf32> to vector<4x64xf32>
    %9 = vector.shape_cast %6 : vector<4x64xf32> to vector<1x4x64xf32>
    tpu.vector_store %arg3[%c0_9, %c2, %c0_10], %9 {strides = array<i32>} : memref<2x8x64xf32, #tpu.memory_space<vmem>>, vector<1x4x64xf32>,
    %10 = vector.extract_strided_slice %2 {offsets = [4, 0], sizes = [4, 64], strides = [1, 1]} : vector<8x64xf32> to vector<4x64xf32>
    %c1 = arith.constant 1 : index
    %c2_11 = arith.constant 2 : index
    %c0_12 = arith.constant 0 : index
    %11 = vector.load %arg3[%c1, %c2_11, %c0_12] : memref<2x8x64xf32, #tpu.memory_space<vmem>>, vector<1x4x64xf32>
    %12 = vector.shape_cast %11 : vector<1x4x64xf32> to vector<4x64xf32>
    %13 = vector.shape_cast %10 : vector<4x64xf32> to vector<1x4x64xf32>
    tpu.vector_store %arg3[%c1, %c2_11, %c0_12], %13 {strides = array<i32>} : memref<2x8x64xf32, #tpu.memory_space<vmem>>, vector<1x4x64xf32>,
    return
  }
  func.func @transform_0(%arg0: i32) -> (i32, i32) {
    %c0_i32 = arith.constant 0 : i32
    %c0_i32_0 = arith.constant 0 : i32
    return %arg0, %c0_i32 : i32, i32
  }
  func.func @transform_1(%arg0: i32) -> (i32, i32) {
    %c0_i32 = arith.constant 0 : i32
    %c0_i32_0 = arith.constant 0 : i32
    %c0_i32_1 = arith.constant 0 : i32
    return %c0_i32, %c0_i32_0 : i32, i32
  }
  func.func @transform_2(%arg0: i32) -> (i32, i32, i32) {
    %c0_i32 = arith.constant 0 : i32
    %c0_i32_0 = arith.constant 0 : i32
    %c0_i32_1 = arith.constant 0 : i32
    return %arg0, %c0_i32, %c0_i32_0 : i32, i32, i32
  }
}

</mosaic_0001>

<bundles_post_ra>
// kernel: tpu_custom_call.1
= control target key start
LH: loop header
LB: loop body
LE: loop exit
PB: predicated region body
PF: predicated region fallthrough
CT: control target
= control target key end

     0   :  { %s327_s0 = inlined_call_operand.vmem [shape: f32[8,256], index: 0, kind: input, shape index: {}]   ;;  %s328_s1 = inlined_call_operand.vmem [shape: f32[256,64], index: 1, kind: input, shape index: {}]   ;;  %s329_s2 = inlined_call_operand.hbm [shape: f32[2,8,64], index: 2, kind: output, shape index: {}]  }
   0x1   :  { %v45_v0 = vld [vmem:[%s328_s1 + $0xf8] sm:$0xff]  ;;  %v44_v2 = vld [vmem:[%s328_s1 + $0xf0] sm:$0xff]  ;;  %v43_v4 = vld [vmem:[%s328_s1 + $0xe8] sm:$0xff] }
   0x2   :  { %v29_v1 = vld [vmem:[%s328_s1 + $0x78] sm:$0xff]  ;;  %142 = vmatprep.subr.mxu0 %v45_v0  ;;  %v28_v3 = vld [vmem:[%s328_s1 + $0x70] sm:$0xff]  ;;  %v27_v5 = vld [vmem:[%s328_s1 + $0x68] sm:$0xff] }
   0x3   :  { %143 = vmatpush3.msra.mxu0 %v29_v1  ;;  %v42_v6 = vld [vmem:[%s328_s1 + $0xe0] sm:$0xff]  ;;  %v41_v8 = vld [vmem:[%s328_s1 + $0xd8] sm:$0xff]  ;;  %v40_v10 = vld [vmem:[%s328_s1 + $0xd0] sm:$0xff] }
   0x4   :  { %144 = vmatprep.subr.mxu0 %v44_v2  ;;  %v26_v7 = vld [vmem:[%s328_s1 + $0x60] sm:$0xff]  ;;  %v25_v9 = vld [vmem:[%s328_s1 + $0x58] sm:$0xff]  ;;  %v24_v11 = vld [vmem:[%s328_s1 + $0x50] sm:$0xff] }
   0x5   :  { %145 = vmatpush3.msra.mxu0 %v28_v3  ;;  %v39_v12 = vld [vmem:[%s328_s1 + $0xc8] sm:$0xff] }
   0x6   :  { %146 = vmatprep.subr.mxu0 %v43_v4  ;;  %v13_v13 = vld [vmem:[%s327_s0 + $0x8] sm:$0xff] }
   0x7   :  { %147 = vmatpush3.msra.mxu0 %v27_v5  ;;  %v23_v14 = vld [vmem:[%s328_s1 + $0x48] sm:$0xff]  ;;  %110 = vmatprep.mubr.f32.mxu0 %v13_v13 }
   0x8   :  { %148 = vmatprep.subr.mxu0 %v42_v6 }
   0x9   :  { %149 = vmatpush3.msra.mxu0 %v26_v7 }
   0xa   :  { %150 = vmatprep.subr.mxu0 %v41_v8 }
   0xb   :  { %151 = vmatpush3.msra.mxu0 %v25_v9 }
   0xc   :  { %152 = vmatprep.subr.mxu0 %v40_v10 }
   0xd   :  { %7 = vsyncpa [#allocation3], 0  ;;  %153 = vmatpush3.msra.mxu0 %v24_v11  ;;  %v38_v15 = vld [vmem:[%s328_s1 + $0xc0] sm:$0xff]  ;;  %v37_v17 = vld [vmem:[%s328_s1 + $0xb8] sm:$0xff]  ;;  %vm116_vm0 = vcmask 517120   ;;  %v203_v34 = vmov 0.0  }
   0xe   :  { %154 = vmatprep.subr.mxu0 %v39_v12  ;;  %v22_v16 = vld [vmem:[%s328_s1 + $0x40] sm:$0xff]  ;;  %v21_v18 = vld [vmem:[%s328_s1 + $0x38] sm:$0xff]  ;;  %v36_v19 = vld [vmem:[%s328_s1 + $0xb0] sm:$0xff]  ;;  %117 = vst.msk [vmem:[#allocation2] sm:$0x3] %vm116_vm0, %v203_v34  ;;  %s204_s21 = smov [#allocation2]  }
   0xf   :  { %155 = vmatpush3.msra.mxu0 %v23_v14  ;;  %v20_v20 = vld [vmem:[%s328_s1 + $0x30] sm:$0xff]  ;;  %v35_v21 = vld [vmem:[%s328_s1 + $0xa8] sm:$0xff]  ;;  %v34_v23 = vld [vmem:[%s328_s1 + $0xa0] sm:$0xff]  ;;  %118 = vst.msk [vmem:[#allocation2 + $0x8] sm:$0x3] %vm116_vm0, %v203_v34  ;;  %s131_s22 = sshll.u32 %s204_s21, 4  ;;  %s132_s22 = int_to_ptr.vmem [resolvable:$true] %s131_s22 }
  0x10   :  { %156 = vmatprep.subr.mxu0 %v38_v15  ;;  %v19_v22 = vld [vmem:[%s328_s1 + $0x28] sm:$0xff]  ;;  %v18_v24 = vld [vmem:[%s328_s1 + $0x20] sm:$0xff]  ;;  %v33_v25 = vld [vmem:[%s328_s1 + $0x98] sm:$0xff]  ;;  %119 = vst.msk [vmem:[#allocation2 + $0x6] sm:$0x3] %vm116_vm0, %v203_v34  ;;  %vm121_vm1 = vcmask 519168   ;;  %p186_p1 = scmp.lt.s32.totalorder %s132_s22, %s132_s22 }
  0x11   :  { %157 = vmatpush3.msra.mxu0 %v22_v16  ;;  %v17_v26 = vld [vmem:[%s328_s1 + $0x18] sm:$0xff]  ;;  %v32_v27 = vld [vmem:[%s328_s1 + $0x90] sm:$0xff]  ;;  %v31_v29 = vld [vmem:[%s328_s1 + $0x88] sm:$0xff]  ;;  %120 = vst.msk [vmem:[#allocation2 + $0xe] sm:$0x3] %vm116_vm0, %v203_v34  ;;  %vm124_vm2 = vcmask 523268  }
  0x12   :  { %158 = vmatprep.subr.mxu0 %v37_v17  ;;  %v16_v28 = vld [vmem:[%s328_s1 + $0x10] sm:$0xff]  ;;  %v15_v30 = vld [vmem:[%s328_s1 + $0x8] sm:$0xff]  ;;  %v30_v31 = vld [vmem:[%s328_s1 + $0x80] sm:$0xff] }
  0x13   :  { %159 = vmatpush3.msra.mxu0 %v21_v18  ;;  %v14_v32 = vld [vmem:[%s328_s1] sm:$0xff] }
  0x14   :  { %160 = vmatprep.subr.mxu0 %v36_v19  ;;  %v12_v33 = vld [vmem:[%s327_s0] sm:$0xff]  ;;  %s181_s0 = scalar_lea.vmem %s132_s22, 256 }
  0x15   :  { %161 = vmatpush3.msra.mxu0 %v20_v20  ;;  %p182_p0 = scmp.ne.s32.totalorder %s132_s22, %s181_s0  ;;  %p187_p2 = scmp.lt.s32.totalorder %s181_s0, %s181_s0 }
  0x16   :  { %162 = vmatprep.subr.mxu0 %v35_v21 }
  0x17   :  { %163 = vmatpush3.msra.mxu0 %v19_v22  ;;  %p188_p3 = por %p187_p2, %p186_p1 }
  0x18   :  { %164 = vmatprep.subr.mxu0 %v34_v23 }
  0x19   :  { %165 = vmatpush3.msra.mxu0 %v18_v24  ;;  %p189_p4 = pnand %p188_p3, %p182_p0 }
  0x1a   :  { %166 = vmatprep.subr.mxu0 %v33_v25 }
  0x1b   :  { %167 = vmatpush3.msra.mxu0 %v17_v26 }
  0x1c   :  { %168 = vmatprep.subr.mxu0 %v32_v27 }
  0x1d   :  { %169 = vmatpush3.msra.mxu0 %v16_v28 }
  0x1e   :  { %170 = vmatprep.subr.mxu0 %v31_v29 }
  0x1f   :  { %171 = vmatpush3.msra.mxu0 %v15_v30 }
  0x20   :  { %172 = vmatprep.subr.mxu0 %v30_v31 }
  0x21   :  { %173 = vmatpush3.msra.mxu0 %v14_v32 }
  0x22   :  { %111 = vmatmul.mubr.f32.vlgmr.msra.gmra.mxu0 %v12_v33 }
  0xe2   :  { %v174_v35 = vpop.f32.mrf.mxu0 }
  0xe4   :  { %v175_v36 = vpop.f32.mrf.mxu0 }
  0xe5   :  { %v176_v37 = vadd.f32 %v175_v36, %v174_v35 }
  0xe7   :  { %122 = vst.msk [vmem:[#allocation2 + $0x2] sm:$0xf] %vm121_vm1, %v176_v37 }
  0xe8   :  { %125 = vst.msk [vmem:[#allocation2 + $0x6] sm:$0xf0] %vm124_vm2, %v176_v37 }
  0xe9   :  { %192 = shalt.err (!%p189_p4)
}
  0xea   :  { %s205_s1 = smov 128   ;;  %s206_s23 = smov 8  }
  0xeb   :  { %137 = dma.vmem_to_hbm [thread:$0]  %s132_s22, 256, %s329_s2, [#allocation3], %s205_s1, %s205_s1, %s206_s23  }
  0xec   :  { %201 = dma.done.wait [#allocation3], 256  }
  0xed   :  { %202 = vsyncadd [#allocation3], 4294967040 }
  0xee   :  { %141 = vsyncpa [#allocation3], 1 }

</bundles_post_ra>
